<compile_context>
chip_gen: v5e
topology: v5e:2x2
jax: 0.10.0
libtpu: 0.0.40
codegen_flags: <defaults>
</compile_context>

<pallas_src>
import numpy as np
import jax
import jax.numpy as jnp
from jax.experimental import pallas as pl
from jax.experimental.pallas import tpu as pltpu


# ----------------------------------------------------------------------------
# Parameter construction (deterministic, in-script; synthetic -- not a checkpoint)
# ----------------------------------------------------------------------------
def DHaj(bandwidth: int) -> jnp.ndarray:
    """Driscoll-Healy quadrature weights, shape [2*bandwidth]."""
    b = bandwidth
    j = np.arange(2 * b)
    k = np.arange(b)
    w = (2.0 / b) * np.sin(np.pi * (2 * j + 1) / (4.0 * b)) * np.sum(
        (1.0 / (2 * k[None, :] + 1))
        * np.sin((2 * j[:, None] + 1) * (2 * k[None, :] + 1) * np.pi / (4.0 * b)),
        axis=1,
    )
    return jnp.asarray(w, dtype=jnp.float32)


def spherical_harmonics(bandwidth: int, key) -> jnp.ndarray:
    """Complex tensor [l, m, n, n] with l=B, m=2B-1, n=2B.

    Deterministic synthetic values, masked so entries with |m| > l are zero
    (mimics the sparsity structure of true spherical harmonics).
    """
    # TODO(synk): replace synthetic values with true Y_l^m evaluation if exact
    # numerical parity with a specific checkpoint is ever required.
    L, M, n = bandwidth, 2 * bandwidth - 1, 2 * bandwidth
    kr, ki = jax.random.split(key)
    re = jax.random.normal(kr, (L, M, n, n), dtype=jnp.float32)
    im = jax.random.normal(ki, (L, M, n, n), dtype=jnp.float32)
    l_idx = jnp.arange(L)[:, None]
    m_idx = jnp.arange(M)[None, :] - (bandwidth - 1)
    mask = (jnp.abs(m_idx) <= l_idx).astype(jnp.float32)[:, :, None, None]
    return (re + 1j * im) * mask


def _round_up(x: int, m: int) -> int:
    return (x + m - 1) // m * m


# ----------------------------------------------------------------------------
# VMEM budgeting / tile selection
# ----------------------------------------------------------------------------
def _vmem_budget_bytes() -> int:
    """Scoped-VMEM budget: <= 75% of physical VMEM (headroom for compiler scratch,
    critical on v7x's 64 MiB), capped at ~100 MiB (v5e/v6e: 96 MiB, above the old
    64 MiB cap; v7x: 48 MiB)."""
    cap = 128 * 1024 * 1024
    try:
        cap = int(getattr(pltpu.get_tpu_info(), "vmem_capacity_bytes", cap))
    except Exception:
        pass
    return int(min(0.75 * cap, 100 * 1024 * 1024))


def _working_set_bytes(tm: int, tk: int, tn: int, l_pad: int, wbytes: int = 2) -> int:
    """Double-buffered input/weight/grouping/output tiles + f32 accumulators."""
    return (2 * 2 * tm * tk * wbytes          # xr, xi (bf16)
            + 2 * 3 * tk * tn * wbytes        # wr, wi, ws (bf16)
            + 2 * tn * l_pad * wbytes         # grouping matrix (bf16)
            + 2 * tm * l_pad * 4              # output block (f32)
            + 2 * tm * tn * 4)                # cr / ci accumulators (f32)


def _choose_tm(bc: int) -> int:
    """Row tile: minimize row padding, prefer >= 2 row tiles (two v7x TensorCores),
    then the larger tile.  Multiples of 16 for bf16 sublane packing."""
    if bc <= 128:
        return _round_up(bc, 16)              # single row tile
    cands = (512, 256, 128)

    def score(tm):
        bc_p = _round_up(bc, tm)
        return (bc_p - bc, 0 if bc_p // tm >= 2 else 1, -tm)

    return min(cands, key=score)


# ----------------------------------------------------------------------------
# Pallas kernel: tiled complex SHT matmul (Gauss trick) + power-spectrum pooling
# ----------------------------------------------------------------------------
def _maglpool_kernel(xr_ref, xi_ref, wr_ref, wi_ref, ws_ref, g_ref, out_ref,
                     cr_ref, ci_ref):
    j = pl.program_id(1)          # LM tile
    k = pl.program_id(2)          # N2 (contraction) tile
    nj = pl.num_programs(1)
    nk = pl.num_programs(2)

    # New (i, j) tile: reset complex accumulators.
    @pl.when(k == 0)
    def _():
        cr_ref[...] = jnp.zeros_like(cr_ref)
        ci_ref[...] = jnp.zeros_like(ci_ref)

    # New row (BC) tile: reset the per-degree power accumulator (output block).
    @pl.when((j == 0) & (k == 0))
    def _():
        out_ref[...] = jnp.zeros_like(out_ref)

    xr = xr_ref[...]              # [tm, tk] bf16   (quadrature weights pre-folded into w)
    xi = xi_ref[...]              # [tm, tk] bf16

    # Gauss 3-multiply complex matmul, f32 MXU accumulation.  ws = wr + wi is
    # precomputed at build time (static), so the only per-step VPU tile add is
    # the small [tm, tk] xr + xi (v5e's VPU has no native bf16).
    t1 = jnp.dot(xr, wr_ref[...], preferred_element_type=jnp.float32)
    t2 = jnp.dot(xi, wi_ref[...], preferred_element_type=jnp.float32)
    t3 = jnp.dot(xr + xi, ws_ref[...], preferred_element_type=jnp.float32)
    cr_ref[...] += t1 - t2
    ci_ref[...] += t3 - t1 - t2

    # Epilogue for this (i, j) tile: power spectrum + per-degree grouping, once.
    @pl.when(k == nk - 1)
    def _():
        power = cr_ref[...] * cr_ref[...] + ci_ref[...] * ci_ref[...]
        # g is a 0/1 matrix (exact in bf16); casting power to bf16 keeps this a
        # single-pass MXU matmul and halves the g stream.  Accumulation + sqrt in f32.
        out_ref[...] += jnp.dot(power.astype(jnp.bfloat16), g_ref[...],
                                preferred_element_type=jnp.float32)

    # Final step for this row tile: magnitude.
    @pl.when((j == nj - 1) & (k == nk - 1))
    def _():
        out_ref[...] = jnp.sqrt(out_ref[...])


# ----------------------------------------------------------------------------
# One-time weight preprocessing (hoisted out of the forward path)
# ----------------------------------------------------------------------------
def build_maglpool_params(a, harmonics_conj, *, weight_dtype=jnp.bfloat16):
    L, M, n, _ = harmonics_conj.shape
    N2, LM = n * n, L * M
    budget = _vmem_budget_bytes()

    N2_r = _round_up(N2, 128)
    L_pad = _round_up(L, 128)
    LM_r = _round_up(LM, 128)

    # Contraction tile: take all of N2 when modest so the k grid collapses to 1
    # and the x panel is streamed exactly once per row tile.
    tk = N2_r if N2_r <= 8192 else 2048
    # Column tile: target 1024, shrink (tn first, then tk) to the VMEM budget
    # (on v7x's ~48 MiB budget this naturally lands around tn=512).
    tn = min(1024, LM_r)
    TM_REF = 512
    while _working_set_bytes(TM_REF, tk, tn, L_pad) > int(0.9 * budget):
        if tn > 256:
            tn = max(128, _round_up(tn // 2, 128))
        elif tk > 512:
            tk = max(128, _round_up(tk // 2, 128))
        else:
            break

    N2_p = _round_up(N2_r, tk)
    LM_p = _round_up(LM_r, tn)

    # conj harmonics as [N2, LM]; fold quadrature weights a[theta] into the rows
    # (theta varies slowest in the row-major (theta, phi) flattening).
    w = jnp.transpose(harmonics_conj.reshape(LM, N2))                 # [N2, LM] complex
    a_row = jnp.repeat(a.astype(jnp.float32), n)[:, None]             # [N2, 1]
    wr = jnp.real(w).astype(jnp.float32) * a_row
    wi = jnp.imag(w).astype(jnp.float32) * a_row
    ws = wr + wi                                                      # static Gauss operand sum
    pad = ((0, N2_p - N2), (0, LM_p - LM))
    wr = jnp.pad(wr, pad).astype(weight_dtype)
    wi = jnp.pad(wi, pad).astype(weight_dtype)
    ws = jnp.pad(ws, pad).astype(weight_dtype)

    # 0/1 grouping matrix (exact in bf16): column l sums the M orders of degree l.
    # Lane-dense width (multiple of 128) to avoid masked partial stores.
    lm_idx = jnp.arange(LM_p)
    l_idx = jnp.arange(L_pad)
    g = (((lm_idx[:, None] // M) == l_idx[None, :]) & (lm_idx[:, None] < LM))
    g = g.astype(jnp.bfloat16)

    return dict(wr=wr, wi=wi, ws=ws, g=g, L=L, M=M, n=n, N2=N2, LM=LM,
                N2_p=N2_p, LM_p=LM_p, L_pad=L_pad,
                tk=tk, tn=tn, budget=budget, weight_dtype=weight_dtype)


# ----------------------------------------------------------------------------
# Forward
# ----------------------------------------------------------------------------
def magl_pool_forward(x, params):
    """x: [b, c, n, n] complex64  ->  [b, c, l] float32."""
    Bt, C, n, _ = x.shape
    assert n == params["n"]
    L, L_pad = params["L"], params["L_pad"]
    N2, N2_p, LM_p = params["N2"], params["N2_p"], params["LM_p"]
    tk, tn = params["tk"], params["tn"]
    budget = params["budget"]
    wdt = params["weight_dtype"]

    BC = Bt * C
    tm = _choose_tm(BC)
    while tm > 16 and _working_set_bytes(tm, tk, tn, L_pad) > int(0.9 * budget):
        tm = max(16, tm // 2)
    BC_p = _round_up(BC, tm)

    # Activation prep: real/imag split, (optional) pad, bf16 cast.  These fuse into
    # one XLA pass; padding is skipped entirely when shapes already match.
    xr = jnp.real(x).reshape(BC, N2)
    xi = jnp.imag(x).reshape(BC, N2)
    if (BC_p, N2_p) != (BC, N2):
        apad = ((0, BC_p - BC), (0, N2_p - N2))
        xr = jnp.pad(xr, apad)
        xi = jnp.pad(xi, apad)
    xr = xr.astype(wdt)
    xi = xi.astype(wdt)

    gi, gj, gk = BC_p // tm, LM_p // tn, N2_p // tk
    wbytes = jnp.dtype(wdt).itemsize

    # Advisory cost estimate for the XLA scheduler.
    flops = 3 * 2 * BC_p * N2_p * LM_p + 2 * BC_p * LM_p * L_pad
    x_refetch = 1 if gk == 1 else gj            # gk==1 -> x streamed once per row tile
    bytes_accessed = (2 * BC_p * N2_p * wbytes * x_refetch
                      + 3 * N2_p * LM_p * wbytes * gi     # wr/wi/ws refetched per BC tile
                      + LM_p * L_pad * wbytes * gi        # bf16 grouping matrix
                      + BC_p * L_pad * 4)
    cost = pl.CostEstimate(flops=int(flops), transcendentals=0,
                           bytes_accessed=int(bytes_accessed))

    vmem_est = _working_set_bytes(tm, tk, tn, L_pad)
    vmem_limit = int(min(max(2 * vmem_est, 32 * 1024 * 1024), budget))

    out = pl.pallas_call(
        _maglpool_kernel,
        out_shape=jax.ShapeDtypeStruct((BC_p, L_pad), jnp.float32),
        grid_spec=pltpu.PrefetchScalarGridSpec(
            num_scalar_prefetch=0,
            grid=(gi, gj, gk),
            in_specs=[
                pl.BlockSpec((tm, tk), lambda i, j, k: (i, k)),      # xr
                pl.BlockSpec((tm, tk), lambda i, j, k: (i, k)),      # xi
                pl.BlockSpec((tk, tn), lambda i, j, k: (k, j)),      # wr
                pl.BlockSpec((tk, tn), lambda i, j, k: (k, j)),      # wi
                pl.BlockSpec((tk, tn), lambda i, j, k: (k, j)),      # ws = wr + wi
                pl.BlockSpec((tn, L_pad), lambda i, j, k: (j, 0)),   # grouping (bf16)
            ],
            out_specs=pl.BlockSpec((tm, L_pad), lambda i, j, k: (i, 0)),
            scratch_shapes=[pltpu.VMEM((tm, tn), jnp.float32),       # cr accumulator
                            pltpu.VMEM((tm, tn), jnp.float32)],      # ci accumulator
        ),
        compiler_params=pltpu.CompilerParams(
            dimension_semantics=("parallel", "arbitrary", "arbitrary"),
            vmem_limit_bytes=vmem_limit,
        ),
        cost_estimate=cost,
    )(xr, xi, params["wr"], params["wi"], params["ws"], params["g"])

    return out[:BC, :L].reshape(Bt, C, L)


# ----------------------------------------------------------------------------
# Pure-JAX reference (for correctness check)
# ----------------------------------------------------------------------------
def magl_pool_reference(x, a, harmonics_conj):
    c = jnp.einsum('bcij,i,lmij->bclm', x, a.astype(x.dtype), harmonics_conj)
    return jnp.sqrt(jnp.sum(jnp.abs(c) ** 2, axis=-1)).astype(jnp.float32)


if __name__ == "__main__":
    bandwidth = 4
    batch, chan = 2, 4
    n = 2 * bandwidth                       # spatial grid = 8

    key = jax.random.PRNGKey(0)
    kx_r, kx_i, kh = jax.random.split(key, 3)
    x = (jax.random.normal(kx_r, (batch, chan, n, n), dtype=jnp.float32)
         + 1j * jax.random.normal(kx_i, (batch, chan, n, n), dtype=jnp.float32))

    a = DHaj(bandwidth)                                  # [n]
    harm = spherical_harmonics(bandwidth, kh)            # [l, m, n, n] complex
    harm_conj = jnp.conj(harm)

    params = build_maglpool_params(a, harm_conj)         # hoisted weight prep (bf16, a-folded)
    out = magl_pool_forward(x, params)
    out = jax.block_until_ready(out)

    ref = magl_pool_reference(x, a, harm_conj)
    assert out.shape == (batch, chan, bandwidth)
    assert out.dtype == jnp.float32
    # bf16 MXU inputs + bf16 grouping epilogue -> looser tolerance than a pure f32
    # path (accumulation and sqrt stay in f32).
    np.testing.assert_allclose(np.asarray(out), np.asarray(ref), rtol=4e-2, atol=4e-2)

    print("KERNEL_OK")
</pallas_src>

<mosaic_0001>
module attributes {stable_mosaic.version = 11 : i64} {
  func.func @_maglpool_kernel(%arg0: i32, %arg1: i32, %arg2: i32, %arg3: memref<16x128xbf16, #tpu.memory_space<vmem>>, %arg4: memref<16x128xbf16, #tpu.memory_space<vmem>>, %arg5: memref<128x128xbf16, #tpu.memory_space<vmem>>, %arg6: memref<128x128xbf16, #tpu.memory_space<vmem>>, %arg7: memref<128x128xbf16, #tpu.memory_space<vmem>>, %arg8: memref<128x128xbf16, #tpu.memory_space<vmem>>, %arg9: memref<16x128xf32, #tpu.memory_space<vmem>>, %arg10: memref<16x128xf32, #tpu.memory_space<vmem>>, %arg11: memref<16x128xf32, #tpu.memory_space<vmem>>) attributes {dimension_semantics = [#tpu.dimension_semantics<parallel>, #tpu.dimension_semantics<arbitrary>, #tpu.dimension_semantics<arbitrary>], iteration_bounds = array<i64: 1, 1, 1>, scalar_prefetch = 0 : i64, scratch_operands = 2 : i64, tpu.core_type = #tpu.core_type<tc>, window_params = [{transform_indices = @transform_0, window_bounds = array<i64: 16, 128>}, {transform_indices = @transform_1, window_bounds = array<i64: 16, 128>}, {transform_indices = @transform_2, window_bounds = array<i64: 128, 128>}, {transform_indices = @transform_3, window_bounds = array<i64: 128, 128>}, {transform_indices = @transform_4, window_bounds = array<i64: 128, 128>}, {transform_indices = @transform_5, window_bounds = array<i64: 128, 128>}, {transform_indices = @transform_6, window_bounds = array<i64: 16, 128>}]} {
    %c0_i32 = arith.constant 0 : i32
    %0 = arith.cmpi eq, %arg2, %c0_i32 : i32
    %1 = arith.extui %0 : i1 to i32
    %c0_i32_0 = arith.constant 0 : i32
    %2 = arith.cmpi ne, %1, %c0_i32_0 : i32
    scf.if %2 {
      %cst_28 = arith.constant 0.000000e+00 : f32
      %34 = vector.broadcast %cst_28 : f32 to vector<16x128xf32>
      %c0_29 = arith.constant 0 : index
      %c0_30 = arith.constant 0 : index
      %35 = vector.load %arg10[%c0_29, %c0_30] : memref<16x128xf32, #tpu.memory_space<vmem>>, vector<16x128xf32>
      tpu.vector_store %arg10[%c0_29, %c0_30], %34 {strides = array<i32>} : memref<16x128xf32, #tpu.memory_space<vmem>>, vector<16x128xf32>,
      %cst_31 = arith.constant 0.000000e+00 : f32
      %36 = vector.broadcast %cst_31 : f32 to vector<16x128xf32>
      %c0_32 = arith.constant 0 : index
      %c0_33 = arith.constant 0 : index
      %37 = vector.load %arg11[%c0_32, %c0_33] : memref<16x128xf32, #tpu.memory_space<vmem>>, vector<16x128xf32>
      tpu.vector_store %arg11[%c0_32, %c0_33], %36 {strides = array<i32>} : memref<16x128xf32, #tpu.memory_space<vmem>>, vector<16x128xf32>,
    } else {
    }
    %c0_i32_1 = arith.constant 0 : i32
    %3 = arith.cmpi eq, %arg1, %c0_i32_1 : i32
    %c0_i32_2 = arith.constant 0 : i32
    %4 = arith.cmpi eq, %arg2, %c0_i32_2 : i32
    %5 = arith.andi %3, %4 : i1
    %6 = arith.extui %5 : i1 to i32
    %c0_i32_3 = arith.constant 0 : i32
    %7 = arith.cmpi ne, %6, %c0_i32_3 : i32
    scf.if %7 {
      %cst_28 = arith.constant 0.000000e+00 : f32
      %34 = vector.broadcast %cst_28 : f32 to vector<16x128xf32>
      %c0_29 = arith.constant 0 : index
      %c0_30 = arith.constant 0 : index
      %35 = vector.load %arg9[%c0_29, %c0_30] : memref<16x128xf32, #tpu.memory_space<vmem>>, vector<16x128xf32>
      tpu.vector_store %arg9[%c0_29, %c0_30], %34 {strides = array<i32>} : memref<16x128xf32, #tpu.memory_space<vmem>>, vector<16x128xf32>,
    } else {
    }
    %c0 = arith.constant 0 : index
    %c0_4 = arith.constant 0 : index
    %8 = vector.load %arg3[%c0, %c0_4] : memref<16x128xbf16, #tpu.memory_space<vmem>>, vector<16x128xbf16>
    %c0_5 = arith.constant 0 : index
    %c0_6 = arith.constant 0 : index
    %9 = vector.load %arg4[%c0_5, %c0_6] : memref<16x128xbf16, #tpu.memory_space<vmem>>, vector<16x128xbf16>
    %c0_7 = arith.constant 0 : index
    %c0_8 = arith.constant 0 : index
    %10 = vector.load %arg5[%c0_7, %c0_8] : memref<128x128xbf16, #tpu.memory_space<vmem>>, vector<128x128xbf16>
    %cst = arith.constant dense<0.000000e+00> : vector<16x128xf32>
    %11 = tpu.matmul %8, %10, %cst {dimension_numbers = #tpu.dot_dimension_numbers<[1], [0], [0], [1], [0, 0, 1, 1], [], []>} : vector<16x128xbf16>, vector<128x128xbf16>, vector<16x128xf32> -> vector<16x128xf32>
    %c0_9 = arith.constant 0 : index
    %c0_10 = arith.constant 0 : index
    %12 = vector.load %arg6[%c0_9, %c0_10] : memref<128x128xbf16, #tpu.memory_space<vmem>>, vector<128x128xbf16>
    %cst_11 = arith.constant dense<0.000000e+00> : vector<16x128xf32>
    %13 = tpu.matmul %9, %12, %cst_11 {dimension_numbers = #tpu.dot_dimension_numbers<[1], [0], [0], [1], [0, 0, 1, 1], [], []>} : vector<16x128xbf16>, vector<128x128xbf16>, vector<16x128xf32> -> vector<16x128xf32>
    %14 = arith.addf %8, %9 : vector<16x128xbf16>
    %c0_12 = arith.constant 0 : index
    %c0_13 = arith.constant 0 : index
    %15 = vector.load %arg7[%c0_12, %c0_13] : memref<128x128xbf16, #tpu.memory_space<vmem>>, vector<128x128xbf16>
    %cst_14 = arith.constant dense<0.000000e+00> : vector<16x128xf32>
    %16 = tpu.matmul %14, %15, %cst_14 {dimension_numbers = #tpu.dot_dimension_numbers<[1], [0], [0], [1], [0, 0, 1, 1], [], []>} : vector<16x128xbf16>, vector<128x128xbf16>, vector<16x128xf32> -> vector<16x128xf32>
    %c0_15 = arith.constant 0 : index
    %c0_16 = arith.constant 0 : index
    %17 = vector.load %arg10[%c0_15, %c0_16] : memref<16x128xf32, #tpu.memory_space<vmem>>, vector<16x128xf32>
    %18 = arith.subf %11, %13 : vector<16x128xf32>
    %19 = arith.addf %17, %18 : vector<16x128xf32>
    %c0_17 = arith.constant 0 : index
    %c0_18 = arith.constant 0 : index
    %20 = vector.load %arg10[%c0_17, %c0_18] : memref<16x128xf32, #tpu.memory_space<vmem>>, vector<16x128xf32>
    tpu.vector_store %arg10[%c0_17, %c0_18], %19 {strides = array<i32>} : memref<16x128xf32, #tpu.memory_space<vmem>>, vector<16x128xf32>,
    %c0_19 = arith.constant 0 : index
    %c0_20 = arith.constant 0 : index
    %21 = vector.load %arg11[%c0_19, %c0_20] : memref<16x128xf32, #tpu.memory_space<vmem>>, vector<16x128xf32>
    %22 = arith.subf %16, %11 : vector<16x128xf32>
    %23 = arith.subf %22, %13 : vector<16x128xf32>
    %24 = arith.addf %21, %23 : vector<16x128xf32>
    %c0_21 = arith.constant 0 : index
    %c0_22 = arith.constant 0 : index
    %25 = vector.load %arg11[%c0_21, %c0_22] : memref<16x128xf32, #tpu.memory_space<vmem>>, vector<16x128xf32>
    tpu.vector_store %arg11[%c0_21, %c0_22], %24 {strides = array<i32>} : memref<16x128xf32, #tpu.memory_space<vmem>>, vector<16x128xf32>,
    %c0_i32_23 = arith.constant 0 : i32
    %26 = arith.cmpi eq, %arg2, %c0_i32_23 : i32
    %27 = arith.extui %26 : i1 to i32
    %c0_i32_24 = arith.constant 0 : i32
    %28 = arith.cmpi ne, %27, %c0_i32_24 : i32
    scf.if %28 {
      %c0_28 = arith.constant 0 : index
      %c0_29 = arith.constant 0 : index
      %34 = vector.load %arg10[%c0_28, %c0_29] : memref<16x128xf32, #tpu.memory_space<vmem>>, vector<16x128xf32>
      %c0_30 = arith.constant 0 : index
      %c0_31 = arith.constant 0 : index
      %35 = vector.load %arg10[%c0_30, %c0_31] : memref<16x128xf32, #tpu.memory_space<vmem>>, vector<16x128xf32>
      %36 = arith.mulf %34, %35 : vector<16x128xf32>
      %c0_32 = arith.constant 0 : index
      %c0_33 = arith.constant 0 : index
      %37 = vector.load %arg11[%c0_32, %c0_33] : memref<16x128xf32, #tpu.memory_space<vmem>>, vector<16x128xf32>
      %c0_34 = arith.constant 0 : index
      %c0_35 = arith.constant 0 : index
      %38 = vector.load %arg11[%c0_34, %c0_35] : memref<16x128xf32, #tpu.memory_space<vmem>>, vector<16x128xf32>
      %39 = arith.mulf %37, %38 : vector<16x128xf32>
      %40 = arith.addf %36, %39 : vector<16x128xf32>
      %c0_36 = arith.constant 0 : index
      %c0_37 = arith.constant 0 : index
      %41 = vector.load %arg9[%c0_36, %c0_37] : memref<16x128xf32, #tpu.memory_space<vmem>>, vector<16x128xf32>
      %42 = arith.truncf %40 : vector<16x128xf32> to vector<16x128xbf16>
      %c0_38 = arith.constant 0 : index
      %c0_39 = arith.constant 0 : index
      %43 = vector.load %arg8[%c0_38, %c0_39] : memref<128x128xbf16, #tpu.memory_space<vmem>>, vector<128x128xbf16>
      %cst_40 = arith.constant dense<0.000000e+00> : vector<16x128xf32>
      %44 = tpu.matmul %42, %43, %cst_40 {dimension_numbers = #tpu.dot_dimension_numbers<[1], [0], [0], [1], [0, 0, 1, 1], [], []>} : vector<16x128xbf16>, vector<128x128xbf16>, vector<16x128xf32> -> vector<16x128xf32>
      %45 = arith.addf %41, %44 : vector<16x128xf32>
      %c0_41 = arith.constant 0 : index
      %c0_42 = arith.constant 0 : index
      %46 = vector.load %arg9[%c0_41, %c0_42] : memref<16x128xf32, #tpu.memory_space<vmem>>, vector<16x128xf32>
      tpu.vector_store %arg9[%c0_41, %c0_42], %45 {strides = array<i32>} : memref<16x128xf32, #tpu.memory_space<vmem>>, vector<16x128xf32>,
    } else {
    }
    %c0_i32_25 = arith.constant 0 : i32
    %29 = arith.cmpi eq, %arg1, %c0_i32_25 : i32
    %c0_i32_26 = arith.constant 0 : i32
    %30 = arith.cmpi eq, %arg2, %c0_i32_26 : i32
    %31 = arith.andi %29, %30 : i1
    %32 = arith.extui %31 : i1 to i32
    %c0_i32_27 = arith.constant 0 : i32
    %33 = arith.cmpi ne, %32, %c0_i32_27 : i32
    scf.if %33 {
      %c0_28 = arith.constant 0 : index
      %c0_29 = arith.constant 0 : index
      %34 = vector.load %arg9[%c0_28, %c0_29] : memref<16x128xf32, #tpu.memory_space<vmem>>, vector<16x128xf32>
      %35 = math.sqrt %34 : vector<16x128xf32>
      %c0_30 = arith.constant 0 : index
      %c0_31 = arith.constant 0 : index
      %36 = vector.load %arg9[%c0_30, %c0_31] : memref<16x128xf32, #tpu.memory_space<vmem>>, vector<16x128xf32>
      tpu.vector_store %arg9[%c0_30, %c0_31], %35 {strides = array<i32>} : memref<16x128xf32, #tpu.memory_space<vmem>>, vector<16x128xf32>,
    } else {
    }
    return
  }
  func.func @transform_0(%arg0: i32, %arg1: i32, %arg2: i32) -> (i32, i32) {
    %c0_i32 = arith.constant 0 : i32
    return %arg0, %arg2 : i32, i32
  }
  func.func @transform_1(%arg0: i32, %arg1: i32, %arg2: i32) -> (i32, i32) {
    %c0_i32 = arith.constant 0 : i32
    return %arg0, %arg2 : i32, i32
  }
  func.func @transform_2(%arg0: i32, %arg1: i32, %arg2: i32) -> (i32, i32) {
    %c0_i32 = arith.constant 0 : i32
    return %arg2, %arg1 : i32, i32
  }
  func.func @transform_3(%arg0: i32, %arg1: i32, %arg2: i32) -> (i32, i32) {
    %c0_i32 = arith.constant 0 : i32
    return %arg2, %arg1 : i32, i32
  }
  func.func @transform_4(%arg0: i32, %arg1: i32, %arg2: i32) -> (i32, i32) {
    %c0_i32 = arith.constant 0 : i32
    return %arg2, %arg1 : i32, i32
  }
  func.func @transform_5(%arg0: i32, %arg1: i32, %arg2: i32) -> (i32, i32) {
    %c0_i32 = arith.constant 0 : i32
    %c0_i32_0 = arith.constant 0 : i32
    return %arg1, %c0_i32 : i32, i32
  }
  func.func @transform_6(%arg0: i32, %arg1: i32, %arg2: i32) -> (i32, i32) {
    %c0_i32 = arith.constant 0 : i32
    %c0_i32_0 = arith.constant 0 : i32
    return %arg0, %c0_i32 : i32, i32
  }
}

</mosaic_0001>

<bundles_post_ra>
// kernel: tpu_custom_call.1
= control target key start
LH: loop header
LB: loop body
LE: loop exit
PB: predicated region body
PF: predicated region fallthrough
CT: control target
= control target key end

     0   :  { %11 = vsyncpa [#allocation5], 0  ;;  %s1007_s0 = inlined_call_operand.hbm [shape: bf16[16,128], index: 0, kind: input, shape index: {}]   ;;  %s1008_s1 = inlined_call_operand.hbm [shape: bf16[16,128], index: 1, kind: input, shape index: {}]   ;;  %s1009_s2 = inlined_call_operand.hbm [shape: bf16[128,128], index: 2, kind: input, shape index: {}]   ;;  %s1010_s3 = inlined_call_operand.hbm [shape: bf16[128,128], index: 3, kind: input, shape index: {}]   ;;  %s1011_s4 = inlined_call_operand.hbm [shape: bf16[128,128], index: 4, kind: input, shape index: {}]   ;;  %s1012_s5 = inlined_call_operand.hbm [shape: bf16[128,128], index: 5, kind: input, shape index: {}]   ;;  %s1013_s6 = inlined_call_operand.hbm [shape: f32[16,128], index: 6, kind: output, shape index: {}]  }
   0x1   :  { %12 = vsyncpa [#allocation8], 0 }
   0x2   :  { %13 = vsyncpa [#allocation11], 0 }
   0x3   :  { %14 = vsyncpa [#allocation14], 0 }
   0x4   :  { %15 = vsyncpa [#allocation6], 0  ;;  %s33_s23 = sshll.u32 %s1008_s1, 4  ;;  %s922_s24 = smov [#allocation7]   ;;  %s34_s23 = int_to_ptr.hbm [resolvable:$true] %s33_s23 }
   0x5   :  { %s35_s25 = sshll.u32 %s922_s24, 4  ;;  %s59_s28 = sshll.u32 %s1010_s3, 4  ;;  %s36_s25 = int_to_ptr.vmem [resolvable:$true] %s35_s25  ;;  %s60_s28 = int_to_ptr.hbm [resolvable:$true] %s59_s28 }
   0x6   :  { %s923_s29 = smov 64   ;;  %s924_s30 = smov 4  }
   0x7   :  { %41 = dma.hbm_to_vmem [thread:$0]  %s34_s23, 128, %s36_s25, [#allocation8], %s923_s29, %s923_s29, %s924_s30  }
   0x8   :  { %s925_s7 = smov [#allocation10]   ;;  %s20_s1 = sshll.u32 %s1007_s0, 4  ;;  %s21_s1 = int_to_ptr.hbm [resolvable:$true] %s20_s1 }
   0x9   :  { %s61_s8 = sshll.u32 %s925_s7, 4  ;;  %s46_s12 = sshll.u32 %s1009_s2, 4  ;;  %s62_s8 = int_to_ptr.vmem [resolvable:$true] %s61_s8  ;;  %s47_s12 = int_to_ptr.hbm [resolvable:$true] %s46_s12 }
   0xa   :  { %67 = dma.hbm_to_vmem [thread:$0]  %s60_s28, 1024, %s62_s8, [#allocation11], %s923_s29, %s923_s29, %s924_s30  }
   0xb   :  { %s926_s13 = smov [#allocation4]   ;;  %s927_s15 = smov [#allocation9]  }
   0xc   :  { %s22_s14 = sshll.u32 %s926_s13, 4  ;;  %s48_s0 = sshll.u32 %s927_s15, 4  ;;  %s23_s14 = int_to_ptr.vmem [resolvable:$true] %s22_s14  ;;  %s49_s0 = int_to_ptr.vmem [resolvable:$true] %s48_s0 }
   0xd   :  { %28 = dma.hbm_to_vmem [thread:$0]  %s21_s1, 128, %s23_s14, [#allocation5], %s923_s29, %s923_s29, %s924_s30  }
   0xe   :  { %s72_s18 = sshll.u32 %s1011_s4, 4  ;;  %s85_s20 = sshll.u32 %s1012_s5, 4  ;;  %s73_s18 = int_to_ptr.hbm [resolvable:$true] %s72_s18  ;;  %s86_s20 = int_to_ptr.hbm [resolvable:$true] %s85_s20 }
   0xf   :  { %54 = dma.hbm_to_vmem [thread:$0]  %s47_s12, 1024, %s49_s0, [#allocation8], %s923_s29, %s923_s29, %s924_s30  }
  0x10   :  { %s928_s21 = smov [#allocation12]   ;;  %s929_s23 = smov [#allocation13]  }
  0x11   :  { %s74_s22 = sshll.u32 %s928_s21, 4  ;;  %s87_s4 = sshll.u32 %s929_s23, 4  ;;  %s75_s22 = int_to_ptr.vmem [resolvable:$true] %s74_s22  ;;  %s88_s4 = int_to_ptr.vmem [resolvable:$true] %s87_s4 }
  0x12   :  { %80 = dma.hbm_to_vmem [thread:$0]  %s73_s18, 1024, %s75_s22, [#allocation11], %s923_s29, %s923_s29, %s924_s30  }
  0x13   :  { %93 = dma.hbm_to_vmem [thread:$0]  %s86_s20, 1024, %s88_s4, [#allocation14], %s923_s29, %s923_s29, %s924_s30  }
  0x14   :  { %912 = dma.done.wait [#allocation5], 128  }
  0x15   :  { %913 = vsyncadd [#allocation5], 4294967168 }
  0x16   :  { %914 = dma.done.wait [#allocation8], 1152  }
  0x17   :  { %915 = vsyncadd [#allocation8], 4294966144 }
  0x18   :  { %916 = dma.done.wait [#allocation11], 2048  }
  0x19   :  { %917 = vsyncadd [#allocation11], 4294965248 }
  0x1a   :  { %918 = dma.done.wait [#allocation14], 1024  }
  0x1b   :  { %919 = vsyncadd [#allocation14], 4294966272  ;;  %v703_v0 = vld [vmem:[#allocation9 + $0x38] sm:$0xff]  ;;  %v702_v3 = vld [vmem:[#allocation9 + $0x30] sm:$0xff]  ;;  %s930_s5 = smov [#allocation15]   ;;  %s542_s27 = sshll.u32 %s1013_s6, 4  ;;  %s543_s27 = int_to_ptr.hbm [resolvable:$true] %s542_s27 }
  0x1c   :  { %v711_v1 = vld [vmem:[#allocation10 + $0x38] sm:$0xff]  ;;  %207 = vmatpush.bf16.msra.mxu0 %v703_v0  ;;  %v710_v4 = vld [vmem:[#allocation10 + $0x30] sm:$0xff]  ;;  %v701_v6 = vld [vmem:[#allocation9 + $0x28] sm:$0xff]  ;;  %s540_s24 = sshll.u32 %s930_s5, 4  ;;  %s931_s28 = smov 128   ;;  %s541_s24 = int_to_ptr.vmem [resolvable:$true] %s540_s24 }
  0x1d   :  { %v719_v2 = vld [vmem:[#allocation12 + $0x38] sm:$0xff]  ;;  %291 = vmatpush.bf16.msra.mxu1 %v711_v1  ;;  %v718_v5 = vld [vmem:[#allocation12 + $0x30] sm:$0xff]  ;;  %v709_v7 = vld [vmem:[#allocation10 + $0x28] sm:$0xff]  ;;  %s932_s29 = smov 8  }
  0x1e   :  { %376 = vmatpush.bf16.msra.mxu2 %v719_v2  ;;  %v717_v8 = vld [vmem:[#allocation12 + $0x28] sm:$0xff]  ;;  %v727_v9 = vld [vmem:[#allocation13 + $0x38] sm:$0xff]  ;;  %v700_v10 = vld [vmem:[#allocation9 + $0x20] sm:$0xff] }
  0x1f   :  { %v708_v11 = vld [vmem:[#allocation10 + $0x20] sm:$0xff]  ;;  %488 = vmatpush.bf16.msra.mxu3 %v727_v9  ;;  %v726_v13 = vld [vmem:[#allocation13 + $0x30] sm:$0xff]  ;;  %v699_v14 = vld [vmem:[#allocation9 + $0x18] sm:$0xff] }
  0x20   :  { %208 = vmatpush.bf16.msra.mxu0 %v702_v3  ;;  %v716_v12 = vld [vmem:[#allocation12 + $0x20] sm:$0xff]  ;;  %v707_v15 = vld [vmem:[#allocation10 + $0x18] sm:$0xff]  ;;  %v698_v17 = vld [vmem:[#allocation9 + $0x10] sm:$0xff] }
  0x21   :  { %292 = vmatpush.bf16.msra.mxu1 %v710_v4  ;;  %v715_v16 = vld [vmem:[#allocation12 + $0x18] sm:$0xff]  ;;  %v706_v18 = vld [vmem:[#allocation10 + $0x10] sm:$0xff]  ;;  %v697_v22 = vld [vmem:[#allocation9 + $0x8] sm:$0xff] }
  0x22   :  { %377 = vmatpush.bf16.msra.mxu2 %v718_v5  ;;  %v714_v19 = vld [vmem:[#allocation12 + $0x10] sm:$0xff]  ;;  %v135_v21 = vld [vmem:[#allocation7] sm:$0xff]   ;;  %v705_v23 = vld [vmem:[#allocation10 + $0x8] sm:$0xff] }
  0x23   :  { %489 = vmatpush.bf16.msra.mxu3 %v726_v13  ;;  %v133_v20 = vld [vmem:[#allocation4] sm:$0xff]   ;;  %v307_v26 = vunpack.c.l.bf16 %v135_v21  ;;  %v308_v27 = vunpack.c.h.bf16 %v135_v21  ;;  %v713_v28 = vld [vmem:[#allocation12 + $0x8] sm:$0xff]  ;;  %v696_v29 = vld [vmem:[#allocation9] sm:$0xff] }
  0x24   :  { %209 = vmatpush.bf16.msra.mxu0 %v701_v6  ;;  %v305_v24 = vunpack.c.l.bf16 %v133_v20  ;;  %v306_v25 = vunpack.c.h.bf16 %v133_v20  ;;  %v704_v30 = vld [vmem:[#allocation10] sm:$0xff]  ;;  %v694_v34 = vld [vmem:[#allocation4] sm:$0xff]  ;;  %v695_v35 = vld [vmem:[#allocation7] sm:$0xff] }
  0x25   :  { %293 = vmatpush.bf16.msra.mxu1 %v709_v7  ;;  %v712_v33 = vld [vmem:[#allocation12] sm:$0xff]  ;;  %v725_v37 = vld [vmem:[#allocation13 + $0x28] sm:$0xff]  ;;  %v723_v39 = vld [vmem:[#allocation13 + $0x18] sm:$0xff] }
  0x26   :  { %378 = vmatpush.bf16.msra.mxu2 %v717_v8  ;;  %v309_v31 = vadd.f32 %v307_v26, %v305_v24  ;;  %v310_v32 = vadd.f32 %v308_v27, %v306_v25  ;;  %v724_v38 = vld [vmem:[#allocation13 + $0x20] sm:$0xff]  ;;  %v722_v40 = vld [vmem:[#allocation13 + $0x10] sm:$0xff]  ;;  %v721_v41 = vld [vmem:[#allocation13 + $0x8] sm:$0xff] }
  0x27   :  { %490 = vmatpush.bf16.msra.mxu3 %v725_v37  ;;  %v720_v42 = vld [vmem:[#allocation13] sm:$0xff] }
  0x28   :  { %210 = vmatpush.bf16.msra.mxu0 %v700_v10  ;;  %v311_v36 = vpack.c.bf16 %v310_v32, %v309_v31 }
  0x29   :  { %294 = vmatpush.bf16.msra.mxu1 %v708_v11 }
  0x2a   :  { %379 = vmatpush.bf16.msra.mxu2 %v716_v12 }
  0x2b   :  { %491 = vmatpush.bf16.msra.mxu3 %v724_v38 }
  0x2c   :  { %211 = vmatpush.bf16.msra.mxu0 %v699_v14 }
  0x2d   :  { %295 = vmatpush.bf16.msra.mxu1 %v707_v15 }
  0x2e   :  { %380 = vmatpush.bf16.msra.mxu2 %v715_v16 }
  0x2f   :  { %492 = vmatpush.bf16.msra.mxu3 %v723_v39 }
  0x30   :  { %212 = vmatpush.bf16.msra.mxu0 %v698_v17 }
  0x31   :  { %296 = vmatpush.bf16.msra.mxu1 %v706_v18 }
  0x32   :  { %381 = vmatpush.bf16.msra.mxu2 %v714_v19 }
  0x33   :  { %493 = vmatpush.bf16.msra.mxu3 %v722_v40 }
  0x34   :  { %213 = vmatpush.bf16.msra.mxu0 %v697_v22 }
  0x35   :  { %297 = vmatpush.bf16.msra.mxu1 %v705_v23 }
  0x36   :  { %382 = vmatpush.bf16.msra.mxu2 %v713_v28 }
  0x37   :  { %494 = vmatpush.bf16.msra.mxu3 %v721_v41 }
  0x38   :  { %214 = vmatpush.bf16.msra.mxu0 %v696_v29 }
  0x39   :  { %298 = vmatpush.bf16.msra.mxu1 %v704_v30 }
  0x3a   :  { %383 = vmatpush.bf16.msra.mxu2 %v712_v33 }
  0x3b   :  { %215 = vmatmul.bf16.vlgmr.msra.gmra.mxu0 %v694_v34  ;;  %495 = vmatpush.bf16.msra.mxu3 %v720_v42 }
  0x3c   :  { %299 = vmatmul.bf16.vlgmr.msra.gmra.mxu1 %v695_v35 }
  0x3d   :  { %384 = vmatmul.bf16.vlgmr.msra.gmra.mxu2 %v311_v36 }
  0xb8   :  { %v216_v43 = vpop.f32.mrf.mxu0 }
  0xb9   :  { %v300_v44 = vpop.f32.mrf.mxu1 }
  0xba   :  { %v392_v51 = vsub.f32 %v216_v43, %v300_v44 }
  0xbc   :  { %v413_v56 = vmul.f32 %v392_v51, %v392_v51 }
  0xc0   :  { %v385_v45 = vpop.f32.mrf.mxu2  ;;  %v218_v47 = vpop.f32.mrf.mxu0 }
  0xc1   :  { %v400_v46 = vsub.f32 %v385_v45, %v216_v43  ;;  %v302_v48 = vpop.f32.mrf.mxu1 }
  0xc2   :  { %v393_v52 = vsub.f32 %v218_v47, %v302_v48 }
  0xc3   :  { %v402_v49 = vsub.f32 %v400_v46, %v300_v44 }
  0xc4   :  { %v414_v57 = vmul.f32 %v393_v52, %v393_v52 }
  0xc5   :  { %v417_v54 = vmul.f32 %v402_v49, %v402_v49 }
  0xc7   :  { %v419_v59 = vadd.f32 %v417_v54, %v413_v56 }
  0xc8   :  { %v387_v50 = vpop.f32.mrf.mxu2 }
  0xc9   :  { %v401_v53 = vsub.f32 %v387_v50, %v218_v47 }
  0xcb   :  { %v403_v55 = vsub.f32 %v401_v53, %v302_v48 }
  0xcd   :  { %v418_v58 = vmul.f32 %v403_v55, %v403_v55 }
  0xcf   :  { %v420_v60 = vadd.f32 %v418_v58, %v414_v57 }
  0xd1   :  { %v423_v61 = vpack.c.bf16 %v420_v60, %v419_v59 }
  0xd3   :  { %496 = vmatmul.bf16.vlgmr.msra.gmra.mxu3 %v423_v61 }
 0x156   :  { %v497_v62 = vpop.f32.mrf.mxu3 }
 0x157   :  { %740 = vrsqrt.f32 %v497_v62  ;;  %vm517_vm0 = vcmp.eq.f32.partialorder %v497_v62, inf  ;;  %v520_v10 = vand.u32 2147483648, %v497_v62  ;;  %vm519_vm1 = vcmp.eq.f32.partialorder %v497_v62, 0.0 }
 0x15d   :  { %v741_v0 = vpop.eup %740 }
 0x15e   :  { %v499_v63 = vpop.f32.mrf.mxu3  ;;  %v511_v1 = vmul.f32 %v741_v0, %v497_v62 }
 0x15f   :  { %742 = vrsqrt.f32 %v499_v63  ;;  %vm529_vm2 = vcmp.eq.f32.partialorder %v499_v63, inf  ;;  %v532_v17 = vand.u32 2147483648, %v499_v63  ;;  %vm531_vm3 = vcmp.eq.f32.partialorder %v499_v63, 0.0 }
 0x160   :  { %v512_v2 = vmul.f32 %v741_v0, %v511_v1 }
 0x162   :  { %v513_v3 = vmul.f32 0.5, %v512_v2 }
 0x164   :  { %v514_v4 = vsub.f32 1.5, %v513_v3 }
 0x165   :  { %v743_v5 = vpop.eup %742 }
 0x166   :  { %v515_v6 = vmul.f32 %v741_v0, %v514_v4  ;;  %v523_v7 = vmul.f32 %v743_v5, %v499_v63 }
 0x168   :  { %v516_v8 = vmul.f32 %v515_v6, %v497_v62  ;;  %v524_v9 = vmul.f32 %v743_v5, %v523_v7 }
 0x16a   :  { %v518_v11 = vsel %vm517_vm0, %v497_v62, %v516_v8  ;;  %v525_v12 = vmul.f32 0.5, %v524_v9 }
 0x16b   :  { %v521_v13 = vsel %vm519_vm1, %v520_v10, %v518_v11 }
 0x16c   :  { %534 = vst [vmem:[#allocation15] sm:$0xff] %v521_v13  ;;  %v526_v14 = vsub.f32 1.5, %v525_v12 }
 0x16e   :  { %v527_v15 = vmul.f32 %v743_v5, %v526_v14 }
 0x170   :  { %v528_v16 = vmul.f32 %v527_v15, %v499_v63 }
 0x172   :  { %v530_v18 = vsel %vm529_vm2, %v499_v63, %v528_v16 }
 0x173   :  { %v533_v19 = vsel %vm531_vm3, %v532_v17, %v530_v18 }
 0x174   :  { %535 = vst [vmem:[#allocation15 + $0x8] sm:$0xff] %v533_v19 }
 0x175   :  { %548 = dma.vmem_to_hbm [thread:$0]  %s541_s24, 256, %s543_s27, [#allocation6], %s931_s28, %s931_s28, %s932_s29  }
 0x176   :  { %920 = dma.done.wait [#allocation6], 256  }
 0x177   :  { %921 = vsyncadd [#allocation6], 4294967040 }
 0x178   :  { %553 = vsyncpa [#allocation5], 1 }
 0x179   :  { %554 = vsyncpa [#allocation8], 1 }
 0x17a   :  { %555 = vsyncpa [#allocation11], 1 }
 0x17b   :  { %556 = vsyncpa [#allocation14], 1 }
 0x17c   :  { %557 = vsyncpa [#allocation6], 1 }

</bundles_post_ra>
